<compile_context>
chip_gen: v6e
topology: v6e:2x2x1
jax: 0.10.0
libtpu: 0.0.40
codegen_flags: <defaults>
</compile_context>

<pallas_src>
import jax
import jax.numpy as jnp
from jax.experimental import pallas as pl
from jax.experimental.pallas import tpu as pltpu


def _round_up(x: int, m: int) -> int:
    return (x + m - 1) // m * m


def _build_sinusoidal_table(dim: int, seq_len: int) -> jnp.ndarray:
    """Deterministic init mirroring the PyTorch __init__ exactly (float32)."""
    assert dim % 2 == 0, "dim must be divisible by 2"
    pos_seq = jnp.linspace(0.0, seq_len - 1, seq_len)             # (seq_len,)
    dim_seq = jnp.linspace(0.0, dim - 2, dim // 2)                 # (dim//2,)
    pos, dim_2i = jnp.meshgrid(pos_seq, dim_seq, indexing="ij")    # (seq_len, dim//2)
    angle = pos / jnp.power(10000.0, dim_2i / dim)
    pe_2i = jnp.sin(angle)
    pe_2i_plus_1 = jnp.cos(angle)
    table = jnp.stack((pe_2i, pe_2i_plus_1), axis=2).reshape(seq_len, dim)
    return table.astype(jnp.float32)


def _gather_block_kernel(idx_ref, table_ref, out_ref):
    """One grid step: gather BLOCK_B rows from the VMEM-resident table.

    idx_ref:   (BLOCK_B, 1) int32   -- batch indices on sublanes
    table_ref: (seq_len, dim) f32   -- whole table, resident across grid steps
    out_ref:   (BLOCK_B, dim) f32
    """
    seq_len = table_ref.shape[0]
    block_b = idx_ref.shape[0]

    # In-kernel clamp: TPU has no nn.Embedding-style OOB error; clamping keeps
    # out-of-range timesteps from producing garbage (semantic divergence from
    # PyTorch, which would raise, is documented).
    idx = jnp.clip(idx_ref[...], 0, seq_len - 1)                    # (BLOCK_B, 1)

    # One-hot gather on the MXU: (BLOCK_B, seq_len) @ (seq_len, dim).
    positions = jax.lax.broadcasted_iota(jnp.int32, (block_b, seq_len), 1)
    onehot = (idx == positions).astype(table_ref.dtype)             # (BLOCK_B, seq_len)
    gathered = jnp.dot(
        onehot,
        table_ref[...],
        preferred_element_type=jnp.float32,
        precision=jax.lax.Precision.HIGHEST,   # exact f32 row selection
    )
    out_ref[...] = gathered.astype(out_ref.dtype)


def sinusoidal_positional_encoding(
    x: jnp.ndarray,
    table: jnp.ndarray,
    *,
    block_b: int = 256,
    force_pallas: bool = False,
) -> jnp.ndarray:
    """Forward pass: x (B,) integer timesteps -> (B, dim) float32 embeddings."""
    batch = x.shape[0]
    seq_len, dim = table.shape
    idx = x.astype(jnp.int32)

    # Tiny-workload guard: when the whole output is only a few KiB, a
    # standalone pallas_call's launch/pipeline fixed cost dwarfs the gather;
    # let XLA do it (and fuse it into neighbors) unless explicitly forced.
    if not force_pallas and batch * dim * 4 < (64 << 10):
        return table[jnp.clip(idx, 0, seq_len - 1)]

    # Batch blocking: multiple of 8 sublanes, up to `block_b` rows per step.
    block_b = max(8, _round_up(block_b, 8))
    bb = min(block_b, _round_up(batch, 8))
    padded_batch = _round_up(batch, bb)
    num_blocks = padded_batch // bb

    # Indices as (padded_batch, 1): batch on sublanes -> no transpose needed
    # for the one-hot compare. Padding rows are 0 (in range, sliced off below).
    idx2d = jnp.zeros((padded_batch, 1), jnp.int32).at[:batch, 0].set(idx)

    # VMEM budget: table (possibly double-buffered) + in/out blocks + slack.
    table_bytes = seq_len * dim * table.dtype.itemsize
    block_bytes = bb * dim * 4 + bb * 4
    vmem_limit = int(min(2 * table_bytes + 4 * block_bytes + (4 << 20), 100 << 20))

    out = pl.pallas_call(
        _gather_block_kernel,
        out_shape=jax.ShapeDtypeStruct((padded_batch, dim), table.dtype),
        grid=(num_blocks,),
        in_specs=[
            # Per-block index column.
            pl.BlockSpec((bb, 1), lambda i: (i, 0)),
            # Whole table, constant index_map -> DMA'd once, VMEM-resident.
            pl.BlockSpec((seq_len, dim), lambda i: (0, 0)),
        ],
        out_specs=pl.BlockSpec((bb, dim), lambda i: (i, 0)),
        compiler_params=pltpu.CompilerParams(
            dimension_semantics=("parallel",),   # shard batch blocks across TCs
            vmem_limit_bytes=vmem_limit,
        ),
    )(idx2d, table)

    return out[:batch]


if __name__ == "__main__":
    # Small demo shapes consistent with diffusion-timestep usage.
    dim = 128       # lane-dense output tiles
    seq_len = 64
    batch = 8       # -> one (8, 128) output tile, single grid step

    table = _build_sinusoidal_table(dim, seq_len)

    key = jax.random.PRNGKey(0)
    x = jax.random.randint(key, (batch,), 0, seq_len, dtype=jnp.int32)

    # force_pallas=True so the demo exercises the kernel despite the tiny size.
    out = sinusoidal_positional_encoding(x, table, force_pallas=True)
    out = jax.block_until_ready(out)

    # Reference check against plain-JAX embedding lookup.
    ref = table[x]
    assert out.shape == (batch, dim), out.shape
    assert out.dtype == jnp.float32, out.dtype
    assert jnp.allclose(out, ref, atol=1e-5, rtol=1e-5), "mismatch vs reference"

    print("KERNEL_OK")
</pallas_src>

<mosaic_0001>
module attributes {stable_mosaic.version = 11 : i64} {
  func.func @_gather_block_kernel(%arg0: i32, %arg1: memref<8x1xi32, #tpu.memory_space<vmem>>, %arg2: memref<64x128xf32, #tpu.memory_space<vmem>>, %arg3: memref<8x128xf32, #tpu.memory_space<vmem>>) attributes {dimension_semantics = [#tpu.dimension_semantics<parallel>], iteration_bounds = array<i64: 1>, scalar_prefetch = 0 : i64, scratch_operands = 0 : i64, tpu.core_type = #tpu.core_type<tc>, window_params = [{transform_indices = @transform_0, window_bounds = array<i64: 8, 1>}, {pipeline_mode = #tpu.pipeline_mode<synchronous>, transform_indices = @transform_1, window_bounds = array<i64: 64, 128>}, {transform_indices = @transform_2, window_bounds = array<i64: 8, 128>}]} {
    %c0 = arith.constant 0 : index
    %c0_0 = arith.constant 0 : index
    %0 = vector.load %arg1[%c0, %c0_0] : memref<8x1xi32, #tpu.memory_space<vmem>>, vector<8x1xi32>
    %c0_i32 = arith.constant 0 : i32
    %c63_i32 = arith.constant 63 : i32
    %1 = vector.broadcast %c0_i32 : i32 to vector<8x1xi32>
    %2 = arith.maxsi %1, %0 : vector<8x1xi32>
    %3 = vector.broadcast %c63_i32 : i32 to vector<8x1xi32>
    %4 = arith.minsi %3, %2 : vector<8x1xi32>
    %5 = tpu.iota {dimensions = array<i32: 1>} : vector<8x64xi32>
    %6 = vector.broadcast %4 : vector<8x1xi32> to vector<8x64xi32>
    %7 = arith.cmpi eq, %6, %5 : vector<8x64xi32>
    %8 = arith.extui %7 : vector<8x64xi1> to vector<8x64xi32>
    %9 = arith.sitofp %8 : vector<8x64xi32> to vector<8x64xf32>
    %c0_1 = arith.constant 0 : index
    %c0_2 = arith.constant 0 : index
    %10 = vector.load %arg2[%c0_1, %c0_2] : memref<64x128xf32, #tpu.memory_space<vmem>>, vector<64x128xf32>
    %cst = arith.constant dense<0.000000e+00> : vector<8x128xf32>
    %11 = tpu.matmul %9, %10, %cst {dimension_numbers = #tpu.dot_dimension_numbers<[1], [0], [0], [1], [0, 0, 1, 1], [], []>, precision = #tpu.contract_precision<fp32>} : vector<8x64xf32>, vector<64x128xf32>, vector<8x128xf32> -> vector<8x128xf32>
    %c0_3 = arith.constant 0 : index
    %c0_4 = arith.constant 0 : index
    %12 = vector.load %arg3[%c0_3, %c0_4] : memref<8x128xf32, #tpu.memory_space<vmem>>, vector<8x128xf32>
    tpu.vector_store %arg3[%c0_3, %c0_4], %11 {strides = array<i32>} : memref<8x128xf32, #tpu.memory_space<vmem>>, vector<8x128xf32>,
    return
  }
  func.func @transform_0(%arg0: i32) -> (i32, i32) {
    %c0_i32 = arith.constant 0 : i32
    %c0_i32_0 = arith.constant 0 : i32
    return %arg0, %c0_i32 : i32, i32
  }
  func.func @transform_1(%arg0: i32) -> (i32, i32) {
    %c0_i32 = arith.constant 0 : i32
    %c0_i32_0 = arith.constant 0 : i32
    %c0_i32_1 = arith.constant 0 : i32
    return %c0_i32, %c0_i32_0 : i32, i32
  }
  func.func @transform_2(%arg0: i32) -> (i32, i32) {
    %c0_i32 = arith.constant 0 : i32
    %c0_i32_0 = arith.constant 0 : i32
    return %arg0, %c0_i32 : i32, i32
  }
}

</mosaic_0001>

<bundles_post_ra>
// kernel: tpu_custom_call.1
= control target key start
LH: loop header
LB: loop body
LE: loop exit
PB: predicated region body
PF: predicated region fallthrough
CT: control target
= control target key end

     0   :  { %7 = vsyncpa [#allocation3], 0  ;;  %s1050_s0 = inlined_call_operand.vmem [shape: s32[8,1], index: 0, kind: input, shape index: {}]   ;;  %s1051_s1 = inlined_call_operand.hbm [shape: f32[64,128], index: 1, kind: input, shape index: {}]   ;;  %s1052_s2 = inlined_call_operand.hbm [shape: f32[8,128], index: 2, kind: output, shape index: {}]  }
   0x1   :  { %8 = vsyncpa [#allocation4], 0  ;;  %s828_s9 = smov [#allocation2]  }
   0x2   :  { %s16_s10 = sshll.u32 %s828_s9, 4  ;;  %s17_s10 = int_to_ptr.vmem [resolvable:$true] %s16_s10 }
   0x3   :  { %s792_s11 = scalar_lea.vmem %s17_s10, 1024  ;;  %p797_p1 = scmp.lt.s32.totalorder %s17_s10, %s17_s10 }
   0x4   :  { %p793_p0 = scmp.ne.s32.totalorder %s17_s10, %s792_s11  ;;  %p798_p2 = scmp.lt.s32.totalorder %s792_s11, %s792_s11 }
   0x6   :  { %p799_p3 = por %p798_p2, %p797_p1 }
   0x8   :  { %p800_p4 = pnand %p799_p3, %p793_p0 }
   0xa   :  { %803 = shalt.err (!%p800_p4)
}
   0xb   :  { %s829_s12 = smov 128   ;;  %s830_s13 = smov 8  }
   0xc   :  { %22 = dma.hbm_to_vmem [thread:$0]  %s1051_s1, 1024, %s17_s10, [#allocation3], %s829_s12, %s829_s12, %s830_s13  }
   0xd   :  { %824 = dma.done.wait [#allocation3], 1024  }
   0xe   :  { %825 = vsyncadd [#allocation3], 4294966272  ;;  %v831_v0 = vmov 0   ;;  %v832_v1 = vmov 0.0   ;;  %v26_v2 = vld [vmem:[%s1050_s0] sm:$0xff]  ;;  %v46_v3 = vld [vmem:[#allocation2 + $0x38] sm:$0xff]  ;;  %v31_v53 = vlaneseq }
   0xf   :  { %783 = vset.pattern.permute.xlu0 %v831_v0  ;;  %681 = vmatprep.subr.mxu1 %v832_v1  ;;  %v45_v4 = vld [vmem:[#allocation2 + $0x30] sm:$0xff]  ;;  %vm27_vm0 = vcmp.gt.s32.totalorder %v26_v2, 0  ;;  %v858_v5 = vand.u32 4294901760, %v46_v3  ;;  %v44_v7 = vld [vmem:[#allocation2 + $0x28] sm:$0xff]  ;;  %v43_v8 = vld [vmem:[#allocation2 + $0x20] sm:$0xff]  ;;  %vm833_vm2 = vmmov 0  }
  0x10   :  { %662 = vmatprep.subr.mxu0 %v832_v1  ;;  %v860_v6 = vand.u32 4294901760, %v45_v4  ;;  %v42_v9 = vld [vmem:[#allocation2 + $0x18] sm:$0xff]  ;;  %v28_v10 = vsel %vm27_vm0, %v26_v2, 0  ;;  %v862_v11 = vand.u32 4294901760, %v44_v7  ;;  %v864_v12 = vand.u32 4294901760, %v43_v8  ;;  %v41_v14 = vld [vmem:[#allocation2 + $0x10] sm:$0xff]  ;;  %697 = vmatprep.mubr.msk.f32.mxu1 %vm833_vm2, %v832_v1 }
  0x11   :  { %v866_v13 = vand.u32 4294901760, %v42_v9  ;;  %v40_v15 = vld [vmem:[#allocation2 + $0x8] sm:$0xff]  ;;  %vm29_vm1 = vcmp.lt.s32.totalorder %v28_v10, 63  ;;  %v869_v16 = vsub.f32 %v46_v3, %v858_v5  ;;  %663 = vmatpush3.msra.mxu0 %v858_v5  ;;  %v875_v18 = vand.u32 4294901760, %v41_v14  ;;  %v39_v19 = vld [vmem:[#allocation2] sm:$0xff]  ;;  %678 = vmatprep.mubr.msk.f32.mxu0 %vm833_vm2, %v832_v1  ;;  %s834_s0 = smov [#allocation5]  }
  0x12   :  { %v872_v17 = vsub.f32 %v45_v4, %v860_v6  ;;  %v30_v20 = vsel %vm29_vm1, %v28_v10, 63  ;;  %v878_v21 = vsub.f32 %v44_v7, %v862_v11  ;;  %v881_v22 = vsub.f32 %v43_v8, %v864_v12  ;;  %664 = vmatprep.subr.mxu0 %v832_v1  ;;  %s595_s1 = sshll.u32 %s834_s0, 4  ;;  %s596_s1 = int_to_ptr.vmem [resolvable:$true] %s595_s1 }
  0x13   :  { %v884_v23 = vsub.f32 %v42_v9, %v866_v13  ;;  %34 = vperm.xlu0 %783, %v30_v20   ;;  %v153_v24 = vand.u32 4294901760, %v869_v16  ;;  %v890_v26 = vsub.f32 %v41_v14, %v875_v18  ;;  %665 = vmatpush3.msra.mxu0 %v860_v6  ;;  %v893_v27 = vand.u32 4294901760, %v40_v15  ;;  %s804_s18 = scalar_lea.vmem %s596_s1, 128  ;;  %p809_p6 = scmp.lt.s32.totalorder %s596_s1, %s596_s1 }
  0x14   :  { %v160_v25 = vand.u32 4294901760, %v872_v17  ;;  %v167_v28 = vand.u32 4294901760, %v878_v21  ;;  %v174_v29 = vand.u32 4294901760, %v881_v22  ;;  %666 = vmatprep.subr.mxu0 %v832_v1  ;;  %v898_v30 = vand.u32 4294901760, %v39_v19  ;;  %p805_p5 = scmp.ne.s32.totalorder %s596_s1, %s804_s18  ;;  %p810_p7 = scmp.lt.s32.totalorder %s804_s18, %s804_s18 }
  0x15   :  { %v154_v31 = vsub.f32 %v869_v16, %v153_v24  ;;  %v181_v33 = vand.u32 4294901760, %v884_v23  ;;  %v908_v34 = vsub.f32 %v40_v15, %v893_v27  ;;  %667 = vmatpush3.msra.mxu0 %v862_v11  ;;  %v188_v36 = vand.u32 4294901760, %v890_v26 }
  0x16   :  { %v161_v32 = vsub.f32 %v872_v17, %v160_v25  ;;  %v168_v35 = vsub.f32 %v878_v21, %v167_v28  ;;  %668 = vmatprep.subr.mxu0 %v832_v1  ;;  %v175_v39 = vsub.f32 %v881_v22, %v174_v29  ;;  %v920_v40 = vsub.f32 %v39_v19, %v898_v30  ;;  %p811_p8 = por %p810_p7, %p809_p6 }
  0x17   :  { %v155_v37 = vand.u32 4294901760, %v154_v31  ;;  %669 = vmatpush3.msra.mxu0 %v864_v12  ;;  %v182_v42 = vsub.f32 %v884_v23, %v181_v33  ;;  %v195_v43 = vand.u32 4294901760, %v908_v34  ;;  %v189_v45 = vsub.f32 %v890_v26, %v188_v36 }
  0x18   :  { %v162_v38 = vand.u32 4294901760, %v161_v32  ;;  %670 = vmatprep.subr.mxu0 %v832_v1  ;;  %v169_v41 = vand.u32 4294901760, %v168_v35  ;;  %v176_v44 = vand.u32 4294901760, %v175_v39  ;;  %v202_v46 = vand.u32 4294901760, %v920_v40  ;;  %p812_p9 = pnand %p811_p8, %p805_p5 }
  0x19   :  { %682 = vmatpush3.msra.mxu1 %v155_v37  ;;  %671 = vmatpush3.msra.mxu0 %v866_v13  ;;  %v183_v47 = vand.u32 4294901760, %v182_v42  ;;  %v196_v48 = vsub.f32 %v908_v34, %v195_v43  ;;  %v190_v49 = vand.u32 4294901760, %v189_v45  ;;  %v32_v54 = vand.u32 127, %v31_v53 }
  0x1a   :  { %683 = vmatprep.subr.mxu1 %v832_v1  ;;  %672 = vmatprep.subr.mxu0 %v832_v1  ;;  %v203_v50 = vsub.f32 %v920_v40, %v202_v46  ;;  %vm47_vm3 = vcmask 523264  }
  0x1b   :  { %684 = vmatpush3.msra.mxu1 %v162_v38  ;;  %673 = vmatpush3.msra.mxu0 %v875_v18  ;;  %v197_v51 = vand.u32 4294901760, %v196_v48 }
  0x1c   :  { %685 = vmatprep.subr.mxu1 %v832_v1  ;;  %674 = vmatprep.subr.mxu0 %v832_v1  ;;  %v204_v52 = vand.u32 4294901760, %v203_v50 }
  0x1d   :  { %686 = vmatpush3.msra.mxu1 %v169_v41  ;;  %675 = vmatpush3.msra.mxu0 %v893_v27 }
  0x1e   :  { %687 = vmatprep.subr.mxu1 %v832_v1  ;;  %676 = vmatprep.subr.mxu0 %v832_v1 }
  0x1f   :  { %688 = vmatpush3.msra.mxu1 %v176_v44  ;;  %677 = vmatpush3.msra.mxu0 %v898_v30 }
  0x20   :  { %689 = vmatprep.subr.mxu1 %v832_v1  ;;  %700 = vmatprep.subr.mxu0 %v832_v1 }
  0x21   :  { %690 = vmatpush3.msra.mxu1 %v183_v47 }
  0x22   :  { %691 = vmatprep.subr.mxu1 %v832_v1 }
  0x23   :  { %692 = vmatpush3.msra.mxu1 %v190_v49 }
  0x24   :  { %693 = vmatprep.subr.mxu1 %v832_v1 }
  0x25   :  { %694 = vmatpush3.msra.mxu1 %v197_v51 }
  0x26   :  { %695 = vmatprep.subr.mxu1 %v832_v1 }
  0x27   :  { %696 = vmatpush3.msra.mxu1 %v204_v52 }
  0x28   :  { %719 = vmatprep.subr.mxu1 %v832_v1 }
  0x8e   :  { %v35_v55 = vpop.permute.xlu0 %34 }
  0x8f   :  { %vm36_vm4 = vcmp.eq.s32.totalorder %v35_v55, %v32_v54 }
  0x90   :  { %v959_v56 = vsel %vm36_vm4, 1.0, %v832_v1 }
  0x91   :  { %v49_v57 = vsel %vm47_vm3, %v959_v56, 0  ;;  %698 = vmatmul.mubr.msk.f32.vlgmr.msra.gmra.mxu1 %vm47_vm3, %v959_v56 }
  0x92   :  { %v125_v58 = vsub.f32 %v49_v57, %v49_v57  ;;  %720 = vmatpush3.msra.mxu1 %v858_v5  ;;  %735 = vmatprep.mubr.msk.f32.mxu1 %vm833_vm2, %v832_v1 }
  0x93   :  { %721 = vmatprep.subr.mxu1 %v832_v1 }
  0x94   :  { %722 = vmatpush3.msra.mxu1 %v860_v6  ;;  %v126_v59 = vand.u32 4294901760, %v125_v58 }
  0x95   :  { %723 = vmatprep.subr.mxu1 %v832_v1 }
  0x96   :  { %724 = vmatpush3.msra.mxu1 %v862_v11  ;;  %v127_v60 = vsub.f32 %v125_v58, %v126_v59 }
  0x97   :  { %725 = vmatprep.subr.mxu1 %v832_v1 }
  0x98   :  { %726 = vmatpush3.msra.mxu1 %v864_v12  ;;  %v128_v61 = vand.u32 4294901760, %v127_v60 }
  0x99   :  { %727 = vmatprep.subr.mxu1 %v832_v1 }
  0x9a   :  { %728 = vmatpush3.msra.mxu1 %v866_v13  ;;  %679 = vmatmul.mubr.f32.vlgmr.msra.gmra.mxu0 %v128_v61 }
  0x9b   :  { %701 = vmatpush3.msra.mxu0 %v869_v16  ;;  %729 = vmatprep.subr.mxu1 %v832_v1 }
  0x9c   :  { %702 = vmatprep.subr.mxu0 %v832_v1  ;;  %730 = vmatpush3.msra.mxu1 %v875_v18 }
  0x9d   :  { %703 = vmatpush3.msra.mxu0 %v872_v17  ;;  %731 = vmatprep.subr.mxu1 %v832_v1 }
  0x9e   :  { %704 = vmatprep.subr.mxu0 %v832_v1  ;;  %732 = vmatpush3.msra.mxu1 %v893_v27 }
  0x9f   :  { %705 = vmatpush3.msra.mxu0 %v878_v21  ;;  %733 = vmatprep.subr.mxu1 %v832_v1 }
  0xa0   :  { %706 = vmatprep.subr.mxu0 %v832_v1  ;;  %734 = vmatpush3.msra.mxu1 %v898_v30 }
  0xa1   :  { %707 = vmatpush3.msra.mxu0 %v881_v22  ;;  %736 = vmatmul.mubr.f32.vlgmr.msra.gmra.mxu1 %v126_v59 }
  0xa2   :  { %757 = vmatprep.subr.mxu1 %v832_v1  ;;  %708 = vmatprep.subr.mxu0 %v832_v1 }
  0xa3   :  { %758 = vmatpush3.msra.mxu1 %v858_v5  ;;  %709 = vmatpush3.msra.mxu0 %v884_v23 }
  0xa4   :  { %759 = vmatprep.subr.mxu1 %v832_v1  ;;  %710 = vmatprep.subr.mxu0 %v832_v1 }
  0xa5   :  { %760 = vmatpush3.msra.mxu1 %v860_v6  ;;  %711 = vmatpush3.msra.mxu0 %v890_v26 }
  0xa6   :  { %761 = vmatprep.subr.mxu1 %v832_v1  ;;  %712 = vmatprep.subr.mxu0 %v832_v1 }
  0xa7   :  { %762 = vmatpush3.msra.mxu1 %v862_v11  ;;  %713 = vmatpush3.msra.mxu0 %v908_v34 }
  0xa8   :  { %763 = vmatprep.subr.mxu1 %v832_v1  ;;  %714 = vmatprep.subr.mxu0 %v832_v1 }
  0xa9   :  { %764 = vmatpush3.msra.mxu1 %v864_v12  ;;  %715 = vmatpush3.msra.mxu0 %v920_v40 }
  0xaa   :  { %716 = vmatprep.mubr.msk.f32.mxu0 %vm833_vm2, %v832_v1  ;;  %765 = vmatprep.subr.mxu1 %v832_v1 }
  0xab   :  { %717 = vmatmul.mubr.f32.vlgmr.msra.gmra.mxu0 %v125_v58  ;;  %738 = vmatprep.subr.mxu0 %v832_v1 }
  0xac   :  { %766 = vmatpush3.msra.mxu1 %v866_v13  ;;  %739 = vmatpush3.msra.mxu0 %v153_v24 }
  0xad   :  { %767 = vmatprep.subr.mxu1 %v832_v1  ;;  %740 = vmatprep.subr.mxu0 %v832_v1 }
  0xae   :  { %768 = vmatpush3.msra.mxu1 %v875_v18  ;;  %741 = vmatpush3.msra.mxu0 %v160_v25 }
  0xaf   :  { %769 = vmatprep.subr.mxu1 %v832_v1  ;;  %742 = vmatprep.subr.mxu0 %v832_v1 }
  0xb0   :  { %770 = vmatpush3.msra.mxu1 %v893_v27  ;;  %743 = vmatpush3.msra.mxu0 %v167_v28 }
  0xb1   :  { %771 = vmatprep.subr.mxu1 %v832_v1  ;;  %744 = vmatprep.subr.mxu0 %v832_v1 }
  0xb2   :  { %772 = vmatpush3.msra.mxu1 %v898_v30  ;;  %773 = vmatprep.mubr.msk.f32.mxu1 %vm833_vm2, %v832_v1 }
  0xb3   :  { %745 = vmatpush3.msra.mxu0 %v174_v29  ;;  %774 = vmatmul.mubr.msk.f32.vlgmr.msra.gmra.mxu1 %vm47_vm3, %v959_v56 }
  0xb4   :  { %746 = vmatprep.subr.mxu0 %v832_v1  ;;  %754 = vmatprep.mubr.msk.f32.mxu0 %vm833_vm2, %v832_v1 }
  0xb5   :  { %747 = vmatpush3.msra.mxu0 %v181_v33 }
  0xb6   :  { %748 = vmatprep.subr.mxu0 %v832_v1 }
  0xb7   :  { %749 = vmatpush3.msra.mxu0 %v188_v36 }
  0xb8   :  { %750 = vmatprep.subr.mxu0 %v832_v1 }
  0xb9   :  { %751 = vmatpush3.msra.mxu0 %v195_v43 }
  0xba   :  { %752 = vmatprep.subr.mxu0 %v832_v1 }
  0xbb   :  { %753 = vmatpush3.msra.mxu0 %v202_v46 }
  0xbc   :  { %755 = vmatmul.mubr.msk.f32.vlgmr.msra.gmra.mxu0 %vm47_vm3, %v959_v56 }
 0x151   :  { %v241_v62 = vpop.f32.mrf.mxu1 }
 0x153   :  { %v699_v63 = vpop.f32.mrf.mxu1 }
 0x15a   :  { %v130_v0 = vpop.f32.mrf.mxu0 }
 0x15b   :  { %v242_v8 = vadd.f32 %v241_v62, %v130_v0 }
 0x15c   :  { %v680_v2 = vpop.f32.mrf.mxu0 }
 0x161   :  { %v410_v3 = vpop.f32.mrf.mxu1 }
 0x163   :  { %v737_v4 = vpop.f32.mrf.mxu1 }
 0x16b   :  { %v329_v5 = vpop.f32.mrf.mxu0 }
 0x16c   :  { %v330_v10 = vadd.f32 %v329_v5, %v242_v8 }
 0x16d   :  { %v718_v6 = vpop.f32.mrf.mxu0 }
 0x16e   :  { %v411_v11 = vadd.f32 %v410_v3, %v330_v10 }
 0x173   :  { %v584_v7 = vpop.f32.mrf.mxu1 }
 0x175   :  { %v775_v9 = vpop.f32.mrf.mxu1 }
 0x17c   :  { %v505_v1 = vpop.f32.mrf.mxu0 }
 0x17d   :  { %v506_v12 = vadd.f32 %v505_v1, %v411_v11 }
 0x17e   :  { %v756_v13 = vpop.f32.mrf.mxu0 }
 0x17f   :  { %v585_v14 = vadd.f32 %v584_v7, %v506_v12 }
 0x181   :  { %588 = vst [vmem:[#allocation5] sm:$0xff] %v585_v14 }
 0x182   :  { %815 = shalt.err (!%p812_p9)
}
 0x183   :  { %598 = dma.vmem_to_hbm [thread:$0]  %s596_s1, 128, %s1052_s2, [#allocation4]  }
 0x184   :  { %826 = dma.done.wait [#allocation4], 128  }
 0x185   :  { %827 = vsyncadd [#allocation4], 4294967168 }
 0x186   :  { %602 = vsyncpa [#allocation3], 1 }
 0x187   :  { %603 = vsyncpa [#allocation4], 1 }

</bundles_post_ra>
